<compile_context>
chip_gen: v5e
topology: v5e:2x2
jax: 0.10.0
libtpu: 0.0.40
codegen_flags: <defaults>
</compile_context>

<pallas_src>
import jax
import jax.numpy as jnp
from jax import lax
from jax.experimental import pallas as pl
from jax.experimental.pallas import tpu as pltpu


def _round_up(x, m):
    return (x + m - 1) // m * m


def _cdiv(a, b):
    return (a + b - 1) // b


def _bilinear_kernel(x1_ref, w_ref, x2_ref, b_ref, o_ref):
    # x1_ref: (TB, N1)  w_ref: (N1, N2)  x2_ref: (TB, N2)
    # b_ref:  (1, 1) f32 scalar in SMEM
    # o_ref:  (1, TB) f32 lane-dense output block
    t = jnp.dot(x1_ref[...], w_ref[...], preferred_element_type=jnp.float32)   # MXU, (TB, N2)
    q = t * x2_ref[...].astype(jnp.float32)                                    # VPU, (TB, N2)
    # Row-sum + transpose in one MXU op: ones(1, N2) @ q^T -> (1, TB).
    # (trans_b dot_general, same dimension_numbers pattern as flash attention;
    #  keeps the store lane-dense and avoids per-vreg cross-lane XLU reduces.)
    ones_row = jnp.ones((1, q.shape[1]), jnp.float32)
    s = lax.dot_general(ones_row, q, (((1,), (1,)), ((), ())),
                        preferred_element_type=jnp.float32)                    # (1, TB)
    o_ref[...] = s + b_ref[0, 0]


def _block_vmem_bytes(rows, cols, dtype):
    # VMEM blocks are laid out in (8, 128) tiles (32-bit granularity).
    return _round_up(max(rows, 1), 8) * _round_up(max(cols, 1), 128) * jnp.dtype(dtype).itemsize


def _choose_batch_tile(B, max_batch_block, min_batch_split):
    """Pick (tile_rows, num_tiles, padded_batch) with minimal padding waste."""
    ntiles = max(1, _cdiv(B, max_batch_block))
    if ntiles == 1 and B >= min_batch_split:
        ntiles = 2                       # keep both v7x TensorCores busy
    if ntiles == 1:
        tb = _round_up(B, 8)             # single full-extent tile
    else:
        # lane-dense (1, tb) output block requires tb % 128 == 0 when gridded
        tb = _round_up(_cdiv(B, ntiles), 128)
        ntiles = _cdiv(B, tb)
    return tb, ntiles, ntiles * tb


def bilinear_classifier(x1, x2, weight, bias, *, max_batch_block=8192, min_batch_split=4096):
    """Equivalent of nn.Bilinear(N1, N2, 1).

    x1: (B, N1), x2: (B, N2), weight: (N1, N2), bias: scalar-like. Returns (B, 1) f32.
    Callers may pass bf16 x1/x2 (and optionally bf16 weight) to halve HBM traffic;
    accumulation is always f32. The weight dtype is never silently changed here.
    """
    B, N1 = x1.shape
    B2, N2 = x2.shape
    assert B == B2, "x1/x2 batch mismatch"
    assert weight.shape == (N1, N2)

    tb, ntiles, b_pad = _choose_batch_tile(B, max_batch_block, min_batch_split)
    if b_pad != B:
        pad = b_pad - B
        x1 = jnp.pad(x1, ((0, pad), (0, 0)))
        x2 = jnp.pad(x2, ((0, pad), (0, 0)))
        # Padded rows produce `bias` in the padded output region; sliced off below.

    bias_arr = jnp.asarray(bias, dtype=jnp.float32).reshape(1, 1)

    # Explicit VMEM budget: double-buffered streamed blocks + resident weight.
    working = (2 * (_block_vmem_bytes(tb, N1, x1.dtype)
                    + _block_vmem_bytes(tb, N2, x2.dtype)
                    + _block_vmem_bytes(1, tb, jnp.float32))
               + 2 * _block_vmem_bytes(N1, N2, weight.dtype))
    vmem_limit = int(min(56 << 20, max(32 << 20, working + (8 << 20))))

    cost = pl.CostEstimate(
        flops=2 * b_pad * N1 * N2 + 3 * b_pad * N2,
        transcendentals=0,
        bytes_accessed=(b_pad * N1 * jnp.dtype(x1.dtype).itemsize
                        + b_pad * N2 * jnp.dtype(x2.dtype).itemsize
                        + N1 * N2 * jnp.dtype(weight.dtype).itemsize
                        + b_pad * 4 + 4),
    )

    out_row = pl.pallas_call(
        _bilinear_kernel,
        out_shape=jax.ShapeDtypeStruct((1, b_pad), jnp.float32),
        grid=(ntiles,),
        in_specs=[
            pl.BlockSpec((tb, N1), lambda i: (i, 0)),                   # x1: streamed over batch
            pl.BlockSpec((N1, N2), lambda i: (0, 0)),                   # W: VMEM-resident across steps
            pl.BlockSpec((tb, N2), lambda i: (i, 0)),                   # x2: streamed over batch
            pl.BlockSpec((1, 1), lambda i: (0, 0),
                         memory_space=pltpu.MemorySpace.SMEM),          # bias scalar
        ],
        out_specs=pl.BlockSpec((1, tb), lambda i: (0, i)),              # lane-dense output slab
        compiler_params=pltpu.CompilerParams(
            dimension_semantics=("parallel",),                          # batch-parallel (v7x 2 TCs)
            vmem_limit_bytes=vmem_limit,
        ),
        cost_estimate=cost,
    )(x1, weight, x2, bias_arr)

    return out_row[0, :B][:, None]


if __name__ == "__main__":
    # Shapes consistent with the module: Bilinear(num_inputs1=32, num_inputs2=32, 1)
    N1, N2 = 32, 32

    key = jax.random.PRNGKey(0)
    k_x1, k_x2, k_w, k_b, k_x1l, k_x2l = jax.random.split(key, 6)

    # Deterministic params matching torch.nn.Bilinear's uniform(-1/sqrt(N1), 1/sqrt(N1)) init.
    bound = 1.0 / (N1 ** 0.5)
    weight = jax.random.uniform(k_w, (N1, N2), jnp.float32, minval=-bound, maxval=bound)
    bias = jax.random.uniform(k_b, (), jnp.float32, minval=-bound, maxval=bound)

    # --- small batch: single 8-aligned tile, no grid overhead ---
    B = 8
    x1 = jax.random.normal(k_x1, (B, N1), dtype=jnp.float32)
    x2 = jax.random.normal(k_x2, (B, N2), dtype=jnp.float32)
    out = jax.block_until_ready(bilinear_classifier(x1, x2, weight, bias))
    ref = jnp.einsum("bi,ij,bj->b", x1, weight, x2)[:, None] + bias
    assert out.shape == (B, 1)
    assert jnp.allclose(out, ref, atol=2e-3, rtol=2e-3), float(jnp.max(jnp.abs(out - ref)))

    # --- awkward batch, forced multi-tile grid: exercises the gridded,
    #     weight-resident, lane-dense-output pipeline with minimal padding ---
    Bl = 1037
    x1l = jax.random.normal(k_x1l, (Bl, N1), dtype=jnp.float32)
    x2l = jax.random.normal(k_x2l, (Bl, N2), dtype=jnp.float32)
    outl = jax.block_until_ready(
        bilinear_classifier(x1l, x2l, weight, bias, max_batch_block=512))
    refl = jnp.einsum("bi,ij,bj->b", x1l, weight, x2l)[:, None] + bias
    assert outl.shape == (Bl, 1)
    assert jnp.allclose(outl, refl, atol=2e-3, rtol=2e-3), float(jnp.max(jnp.abs(outl - refl)))

    # --- same batch through the default (large adaptive tile) path ---
    outd = jax.block_until_ready(bilinear_classifier(x1l, x2l, weight, bias))
    assert outd.shape == (Bl, 1)
    assert jnp.allclose(outd, refl, atol=2e-3, rtol=2e-3), float(jnp.max(jnp.abs(outd - refl)))

    print("KERNEL_OK")
</pallas_src>

<mosaic_0001>
module attributes {stable_mosaic.version = 11 : i64} {
  func.func @_bilinear_kernel(%arg0: i32, %arg1: memref<8x32xf32, #tpu.memory_space<vmem>>, %arg2: memref<32x32xf32, #tpu.memory_space<vmem>>, %arg3: memref<8x32xf32, #tpu.memory_space<vmem>>, %arg4: memref<1x1xf32, #tpu.memory_space<smem>>, %arg5: memref<1x8xf32, #tpu.memory_space<vmem>>) attributes {dimension_semantics = [#tpu.dimension_semantics<parallel>], iteration_bounds = array<i64: 1>, scalar_prefetch = 0 : i64, scratch_operands = 0 : i64, tpu.core_type = #tpu.core_type<tc>, window_params = [{transform_indices = @transform_0, window_bounds = array<i64: 8, 32>}, {pipeline_mode = #tpu.pipeline_mode<synchronous>, transform_indices = @transform_1, window_bounds = array<i64: 32, 32>}, {transform_indices = @transform_2, window_bounds = array<i64: 8, 32>}, {transform_indices = @transform_3, window_bounds = array<i64: 1, 1>}, {transform_indices = @transform_4, window_bounds = array<i64: 1, 8>}]} {
    %c0 = arith.constant 0 : index
    %c0_0 = arith.constant 0 : index
    %0 = vector.load %arg1[%c0, %c0_0] : memref<8x32xf32, #tpu.memory_space<vmem>>, vector<8x32xf32>
    %c0_1 = arith.constant 0 : index
    %c0_2 = arith.constant 0 : index
    %1 = vector.load %arg2[%c0_1, %c0_2] : memref<32x32xf32, #tpu.memory_space<vmem>>, vector<32x32xf32>
    %cst = arith.constant dense<0.000000e+00> : vector<8x32xf32>
    %2 = tpu.matmul %0, %1, %cst {dimension_numbers = #tpu.dot_dimension_numbers<[1], [0], [0], [1], [0, 0, 1, 1], [], []>} : vector<8x32xf32>, vector<32x32xf32>, vector<8x32xf32> -> vector<8x32xf32>
    %c0_3 = arith.constant 0 : index
    %c0_4 = arith.constant 0 : index
    %3 = vector.load %arg3[%c0_3, %c0_4] : memref<8x32xf32, #tpu.memory_space<vmem>>, vector<8x32xf32>
    %4 = arith.mulf %2, %3 : vector<8x32xf32>
    %cst_5 = arith.constant 1.000000e+00 : f32
    %5 = vector.broadcast %cst_5 : f32 to vector<1x32xf32>
    %cst_6 = arith.constant dense<0.000000e+00> : vector<1x8xf32>
    %6 = tpu.matmul %5, %4, %cst_6 {dimension_numbers = #tpu.dot_dimension_numbers<[1], [1], [0], [0], [0, 0, 1, 0], [], []>} : vector<1x32xf32>, vector<8x32xf32>, vector<1x8xf32> -> vector<1x8xf32>
    %c0_7 = arith.constant 0 : index
    %c0_8 = arith.constant 0 : index
    %7 = memref.load %arg4[%c0_7, %c0_8] : memref<1x1xf32, #tpu.memory_space<smem>>
    %8 = vector.broadcast %7 : f32 to vector<1x8xf32>
    %9 = arith.addf %6, %8 : vector<1x8xf32>
    %c0_9 = arith.constant 0 : index
    %c0_10 = arith.constant 0 : index
    %10 = vector.load %arg5[%c0_9, %c0_10] : memref<1x8xf32, #tpu.memory_space<vmem>>, vector<1x8xf32>
    tpu.vector_store %arg5[%c0_9, %c0_10], %9 {strides = array<i32>} : memref<1x8xf32, #tpu.memory_space<vmem>>, vector<1x8xf32>,
    return
  }
  func.func @transform_0(%arg0: i32) -> (i32, i32) {
    %c0_i32 = arith.constant 0 : i32
    %c0_i32_0 = arith.constant 0 : i32
    return %arg0, %c0_i32 : i32, i32
  }
  func.func @transform_1(%arg0: i32) -> (i32, i32) {
    %c0_i32 = arith.constant 0 : i32
    %c0_i32_0 = arith.constant 0 : i32
    %c0_i32_1 = arith.constant 0 : i32
    return %c0_i32, %c0_i32_0 : i32, i32
  }
  func.func @transform_2(%arg0: i32) -> (i32, i32) {
    %c0_i32 = arith.constant 0 : i32
    %c0_i32_0 = arith.constant 0 : i32
    return %arg0, %c0_i32 : i32, i32
  }
  func.func @transform_3(%arg0: i32) -> (i32, i32) {
    %c0_i32 = arith.constant 0 : i32
    %c0_i32_0 = arith.constant 0 : i32
    %c0_i32_1 = arith.constant 0 : i32
    return %c0_i32, %c0_i32_0 : i32, i32
  }
  func.func @transform_4(%arg0: i32) -> (i32, i32) {
    %c0_i32 = arith.constant 0 : i32
    %c0_i32_0 = arith.constant 0 : i32
    return %c0_i32, %arg0 : i32, i32
  }
}

</mosaic_0001>

<bundles_post_ra>
// kernel: tpu_custom_call.1
= control target key start
LH: loop header
LB: loop body
LE: loop exit
PB: predicated region body
PF: predicated region fallthrough
CT: control target
= control target key end

     0   :  { %10 = vsyncpa [#allocation4], 0  ;;  %s300_s0 = inlined_call_operand.hbm [shape: f32[8,32], index: 0, kind: input, shape index: {}]   ;;  %s301_s1 = inlined_call_operand.hbm [shape: f32[32,32], index: 1, kind: input, shape index: {}]   ;;  %s302_s2 = inlined_call_operand.hbm [shape: f32[8,32], index: 2, kind: input, shape index: {}]   ;;  %s303_s3 = inlined_call_operand.<no memory space> [shape: f32[1,1], index: 3, kind: input, shape index: {}]   ;;  %s304_s4 = inlined_call_operand.hbm [shape: f32[1,8], index: 4, kind: output, shape index: {}]  }
   0x1   :  { %11 = vsyncpa [#allocation7], 0  ;;  %s28_s17 = sshll.u32 %s301_s1, 4  ;;  %s29_s17 = int_to_ptr.hbm [resolvable:$true] %s28_s17 }
   0x2   :  { %12 = vsyncpa [#allocation5], 0  ;;  %s253_s18 = smov [#allocation6]   ;;  %s18_s22 = sshll.u32 %s300_s0, 4  ;;  %s19_s22 = int_to_ptr.hbm [resolvable:$true] %s18_s22 }
   0x3   :  { %s30_s19 = sshll.u32 %s253_s18, 4  ;;  %s254_s23 = smov 128   ;;  %s31_s19 = int_to_ptr.vmem [resolvable:$true] %s30_s19 }
   0x4   :  { %s255_s24 = smov 8   ;;  %s256_s25 = smov [#allocation3]  }
   0x5   :  { %36 = dma.hbm_to_vmem [thread:$0]  %s29_s17, 512, %s31_s19, [#allocation7], %s254_s23, %s254_s23, %s255_s24  }
   0x6   :  { %s20_s26 = sshll.u32 %s256_s25, 4  ;;  %s42_s29 = sshll.u32 %s302_s2, 4  ;;  %s21_s26 = int_to_ptr.vmem [resolvable:$true] %s20_s26  ;;  %s43_s29 = int_to_ptr.hbm [resolvable:$true] %s42_s29 }
   0x7   :  { %23 = dma.hbm_to_vmem [thread:$0]  %s19_s22, 128, %s21_s26, [#allocation4]  }
   0x8   :  { %s257_s1 = smov [#allocation8]  }
   0x9   :  { %s44_s30 = sshll.u32 %s257_s1, 4  ;;  %s45_s30 = int_to_ptr.vmem [resolvable:$true] %s44_s30 }
   0xa   :  { %47 = dma.hbm_to_vmem [thread:$0]  %s43_s29, 128, %s45_s30, [#allocation7]  }
   0xb   :  { %247 = dma.done.wait [#allocation4], 128  }
   0xc   :  { %248 = vsyncadd [#allocation4], 4294967168 }
   0xd   :  { %249 = dma.done.wait [#allocation7], 640  }
   0xe   :  { %250 = vsyncadd [#allocation7], 4294966656  ;;  %v66_v0 = vld [vmem:[#allocation6 + $0x18] sm:$0xff]  ;;  %v65_v1 = vld [vmem:[#allocation6 + $0x10] sm:$0xff]  ;;  %vm67_vm0 = vcmask 261120   ;;  %v258_v8 = vmov 1.0   ;;  %v94_v9 = vstv %s303_s3 }
   0xf   :  { %83 = vmatpush.msra.mxu0 %v66_v0  ;;  %v64_v2 = vld [vmem:[#allocation6 + $0x8] sm:$0xff]  ;;  %v63_v3 = vld [vmem:[#allocation6] sm:$0xff]  ;;  %v62_v4 = vld [vmem:[#allocation3] sm:$0xff]  ;;  %s259_s5 = smov [#allocation9]   ;;  %s130_s9 = sshll.u32 %s304_s4, 4  ;;  %vm121_vm1 = vcmask 57344   ;;  %s131_s9 = int_to_ptr.hbm [resolvable:$true] %s130_s9 }
  0x10   :  { %v91_v5 = vld [vmem:[#allocation8] sm:$0xff]  ;;  %s128_s6 = sshll.u32 %s259_s5, 4  ;;  %s129_s6 = int_to_ptr.vmem [resolvable:$true] %s128_s6 }
  0x11   :  { %84 = vmatpush.msra.mxu0 %v65_v1 }
  0x13   :  { %85 = vmatpush.msra.mxu0 %v64_v2 }
  0x15   :  { %86 = vmatpush.msra.mxu0 %v63_v3 }
  0x16   :  { %141 = vmatmul.msk.f32.vlgmr.msra.gmra.mxu0 %vm67_vm0, %v62_v4 }
  0x93   :  { %v88_v6 = vpop.f32.mrf.mxu0 }
  0x94   :  { %v92_v7 = vmul.f32 %v91_v5, %v88_v6 }
  0x96   :  { %142 = vmatpush.xpose.msk.msra.mxu1 %vm67_vm0, %v92_v7 }
  0x99   :  { %143 = vmatmul.msk.f32.vlgmr.msra.gmra.mxu1 %vm67_vm0, %v258_v8 }
 0x116   :  { %v118_v10 = vpop.f32.mrf.mxu1 }
 0x117   :  { %v119_v11 = vadd.f32 %v118_v10, %v94_v9 }
 0x119   :  { %122 = vst.msk [vmem:[#allocation9] sm:$0x1] %vm121_vm1, %v119_v11 }
 0x11a   :  { %133 = dma.vmem_to_hbm [thread:$0]  %s129_s6, 16, %s131_s9, [#allocation5]  }
 0x11b   :  { %251 = dma.done.wait [#allocation5], 16  }
 0x11c   :  { %252 = vsyncadd [#allocation5], 4294967280 }
 0x11d   :  { %138 = vsyncpa [#allocation4], 1 }
 0x11e   :  { %139 = vsyncpa [#allocation7], 1 }
 0x11f   :  { %140 = vsyncpa [#allocation5], 1 }

</bundles_post_ra>
